<compile_context>
chip_gen: v7x
topology: tpu7x:2x2x1
jax: 0.10.0
libtpu: 0.0.40
codegen_flags: <defaults>
</compile_context>

<pallas_src>
import jax
import jax.numpy as jnp
import numpy as np
from jax.experimental import pallas as pl
from jax.experimental.pallas import tpu as pltpu


def _round_up(x, m):
    return (x + m - 1) // m * m


_ROW_TILES = (512, 256, 128, 64, 32, 16, 8)      # row counts are multiples of 8
_COL_TILES = (2048, 1024, 512, 256, 128)         # col counts are multiples of 128


def _pick_tile(n, candidates):
    for t in candidates:
        if n % t == 0:
            return t
    return n


def _vmem_limit(nbytes):
    # 2x headroom, at least the v6e/v7x scoped default, capped at v7x physical.
    return int(min(64 * 2**20, max(32 * 2**20, 2 * nbytes)))


# ----------------------------------------------------------------------------
# Kernel A: tiled (rows, K) @ (K, N) + bias, bf16 operands, f32 accumulation.
# Used for (1) the hoisted input-gate projection and (2) hidden2vocab.
# Grid = (N tiles OUTER, row tiles inner): the weight tile's block index is
# constant across the inner sweep, so it is DMA'd once per N tile while the
# (much smaller) activation tiles stream.
# ----------------------------------------------------------------------------
def matmul_bias_kernel(x_ref, w_ref, b_ref, o_ref):
    o_ref[...] = (jnp.dot(x_ref[...], w_ref[...],
                          preferred_element_type=jnp.float32) + b_ref[...])


def _matmul_bias(x, w, b, *, tm, tn):
    M, K = x.shape
    N = w.shape[1]
    nbytes = (2 * (tm * K * x.dtype.itemsize + K * tn * w.dtype.itemsize + tn * 4)
              + 2 * tm * tn * 4)
    return pl.pallas_call(
        matmul_bias_kernel,
        out_shape=jax.ShapeDtypeStruct((M, N), jnp.float32),
        grid_spec=pltpu.PrefetchScalarGridSpec(
            num_scalar_prefetch=0,
            grid=(N // tn, M // tm),                         # weight axis outer
            in_specs=[pl.BlockSpec((tm, K), lambda j, i: (i, 0)),
                      pl.BlockSpec((K, tn), lambda j, i: (0, j)),
                      pl.BlockSpec((1, tn), lambda j, i: (0, j))],
            out_specs=pl.BlockSpec((tm, tn), lambda j, i: (i, j)),
        ),
        compiler_params=pltpu.CompilerParams(
            dimension_semantics=("parallel", "parallel"),    # megacore-shardable
            vmem_limit_bytes=_vmem_limit(nbytes)),
    )(x, w, b)


# ----------------------------------------------------------------------------
# Kernel B: serial LSTM recurrence.  One grid step handles one slab of the
# (independent) LSTM-batch rows; inside, pl.loop runs the B time steps.
# Only h @ W_hh remains on the serial dependent chain: the input-gate term
# (x @ W_ih^T + bias) arrives precomputed in xg_ref.
# ----------------------------------------------------------------------------
def lstm_recurrence_kernel(xg_ref, w_hh_ref, hs_ref, h_scr, c_scr):
    """xg_ref : (B, R, 4*H_p) f32   precomputed input gates, order [i,f,o,g]
    w_hh_ref : (H_p, 4*H_p)  bf16  stacked W_hh^T, same gate order
    hs_ref   : (B, R, H_p)   bf16  hidden state of every LSTM-batch row / step
    h_scr, c_scr : (R, H_p)  f32   recurrent state for this slab of rows
    """
    B = xg_ref.shape[0]
    H_p = hs_ref.shape[-1]

    # Re-initialized every grid step: each slab of LSTM-batch rows is an
    # independent recurrence (so the slab grid axis is truly "parallel").
    h_scr[...] = jnp.zeros_like(h_scr)
    c_scr[...] = jnp.zeros_like(c_scr)

    @pl.loop(0, B)
    def _(t):
        gates = xg_ref[t] + jnp.dot(h_scr[...].astype(jnp.bfloat16),
                                    w_hh_ref[...],
                                    preferred_element_type=jnp.float32)
        ifo = jax.nn.sigmoid(gates[:, :3 * H_p])            # one pass for i,f,o
        g = jnp.tanh(gates[:, 3 * H_p:])
        i = ifo[:, :H_p]
        f = ifo[:, H_p:2 * H_p]
        o = ifo[:, 2 * H_p:]
        c = f * c_scr[...] + i * g
        h = o * jnp.tanh(c)
        c_scr[...] = c
        h_scr[...] = h
        hs_ref[t] = h.astype(hs_ref.dtype)                   # sublane-aligned store


# ----------------------------------------------------------------------------
# One-time weight packing (hoisted out of the per-call path).
# Gate reorder i,f,g,o -> i,f,o,g; pad E,H,V to lane multiples; bf16 matmul
# operands, f32 biases.  Zero-padded lanes provably stay zero in the math.
# ----------------------------------------------------------------------------
def pack_params(params, embed_size, hidden_size, vocab_size):
    E, H, V = embed_size, hidden_size, vocab_size
    E_p = _round_up(E, 128)
    H_p = _round_up(H, 128)
    tv = min(2048, _round_up(V, 128))
    V_p = _round_up(V, tv)

    order = (0, 1, 3, 2)                                     # i,f,g,o -> i,f,o,g
    w_ih = jnp.zeros((E_p, 4 * H_p), jnp.float32)
    w_hh = jnp.zeros((H_p, 4 * H_p), jnp.float32)
    b = jnp.zeros((1, 4 * H_p), jnp.float32)
    for nk, ok in enumerate(order):
        w_ih = w_ih.at[:E, nk * H_p:nk * H_p + H].set(
            params["w_ih_t"][:, ok * H:(ok + 1) * H])
        w_hh = w_hh.at[:H, nk * H_p:nk * H_p + H].set(
            params["w_hh_t"][:, ok * H:(ok + 1) * H])
        b = b.at[:, nk * H_p:nk * H_p + H].set(params["b"][:, ok * H:(ok + 1) * H])

    w_out = jnp.zeros((H_p, V_p), jnp.float32).at[:H, :V].set(params["w_out_t"])
    b_out = jnp.zeros((1, V_p), jnp.float32).at[:, :V].set(params["b_out"])

    packed = dict(embed=params["embed"],
                  w_ih=w_ih.astype(jnp.bfloat16),
                  w_hh=w_hh.astype(jnp.bfloat16),
                  b=b,
                  w_out=w_out.astype(jnp.bfloat16),
                  b_out=b_out)
    dims = dict(E=E, H=H, V=V, E_p=E_p, H_p=H_p, V_p=V_p, tv=tv)
    return packed, dims


# ----------------------------------------------------------------------------
# Forward pass.  recurrence_row_slabs=2 splits the independent LSTM-batch rows
# across v7x's two TensorCores; leave at 1 on single-core chips (v5e/v6e).
# ----------------------------------------------------------------------------
def make_decoder_forward(dims, *, recurrence_row_slabs=1):
    E, V = dims["E"], dims["V"]
    E_p, H_p, V_p, tv = dims["E_p"], dims["H_p"], dims["V_p"], dims["tv"]

    @jax.jit
    def forward(features, captions, packed):
        B, T = captions.shape
        Tp1 = T + 1
        Tp1_p = _round_up(Tp1, 8)

        # Embedding gather + PyTorch cat along dim=1 (axis 1 is the LSTM batch
        # because nn.LSTM is batch_first=False).
        # TODO(synk): embedding gather stays in XLA glue (jnp.take); an
        # in-kernel gather would need scalar-prefetched indices + pl.Element.
        emb = jnp.take(packed["embed"], captions, axis=0)            # (B, T, E)
        x = jnp.concatenate([features[:, None, :].astype(jnp.float32),
                             emb.astype(jnp.float32)], axis=1)       # (B, Tp1, E)
        x_p = (jnp.zeros((B, Tp1_p, E_p), jnp.float32)
               .at[:, :Tp1, :E].set(x).astype(jnp.bfloat16))

        # --- hoisted input-gate projection: XG = x @ W_ih^T + (b_ih+b_hh) ----
        rows_xg = B * Tp1_p
        xg = _matmul_bias(x_p.reshape(rows_xg, E_p), packed["w_ih"], packed["b"],
                          tm=_pick_tile(rows_xg, _ROW_TILES),
                          tn=_pick_tile(4 * H_p, _COL_TILES))
        xg = xg.reshape(B, Tp1_p, 4 * H_p)                           # f32 gates

        # --- serial recurrence: only h @ W_hh on the dependent chain ---------
        n_slabs = recurrence_row_slabs
        if Tp1_p % (8 * max(n_slabs, 1)) != 0:
            n_slabs = 1
        R = Tp1_p // n_slabs
        recur_bytes = (2 * B * R * 4 * H_p * 4      # double-buffered XG slab
                       + 2 * B * R * H_p * 2        # double-buffered hs slab
                       + H_p * 4 * H_p * 2          # resident W_hh
                       + 2 * R * H_p * 4)           # h/c scratch
        hs = pl.pallas_call(
            lstm_recurrence_kernel,
            out_shape=jax.ShapeDtypeStruct((B, Tp1_p, H_p), jnp.bfloat16),
            grid_spec=pltpu.PrefetchScalarGridSpec(
                num_scalar_prefetch=0,
                grid=(n_slabs,),
                in_specs=[pl.BlockSpec((B, R, 4 * H_p), lambda s: (0, s, 0)),
                          pl.BlockSpec((H_p, 4 * H_p), lambda s: (0, 0))],
                out_specs=pl.BlockSpec((B, R, H_p), lambda s: (0, s, 0)),
                scratch_shapes=[pltpu.VMEM((R, H_p), jnp.float32),   # h state
                                pltpu.VMEM((R, H_p), jnp.float32)]), # c state
            compiler_params=pltpu.CompilerParams(
                dimension_semantics=("parallel",),   # slabs independent (v7x 2 TCs)
                vmem_limit_bytes=_vmem_limit(recur_bytes)),
        )(xg, packed["w_hh"])

        # --- hoisted hidden2vocab projection (W_out read once per vocab tile) -
        rows = B * Tp1_p                                             # multiple of 8
        logits = _matmul_bias(hs.reshape(rows, H_p), packed["w_out"],
                              packed["b_out"],
                              tm=_pick_tile(rows, _ROW_TILES), tn=tv)
        # lstm_out[:, :-1, :] -> drop padded / last LSTM-batch rows and vocab pad.
        return logits.reshape(B, Tp1_p, V_p)[:, :T, :V]

    return forward


# ----------------------------------------------------------------------------
# Pure-JAX reference mirroring the kernel numerics (bf16 matmul operands,
# f32 accumulation/state) and the PyTorch batch/time axis swap.
# ----------------------------------------------------------------------------
def reference_forward(features, captions, packed, dims):
    E, V = dims["E"], dims["V"]
    E_p, H_p, V_p = dims["E_p"], dims["H_p"], dims["V_p"]
    B, T = captions.shape
    Tp1 = T + 1
    Tp1_p = _round_up(Tp1, 8)

    emb = jnp.take(packed["embed"], captions, axis=0)
    x = jnp.concatenate([features[:, None, :].astype(jnp.float32),
                         emb.astype(jnp.float32)], axis=1)
    x_p = (jnp.zeros((B, Tp1_p, E_p), jnp.float32)
           .at[:, :Tp1, :E].set(x).astype(jnp.bfloat16))
    xg = (jnp.dot(x_p.reshape(B * Tp1_p, E_p), packed["w_ih"],
                  preferred_element_type=jnp.float32)
          + packed["b"]).reshape(B, Tp1_p, 4 * H_p)

    def step(carry, xg_t):
        h, c = carry
        gates = xg_t + jnp.dot(h.astype(jnp.bfloat16), packed["w_hh"],
                               preferred_element_type=jnp.float32)
        i = jax.nn.sigmoid(gates[:, :H_p])
        f = jax.nn.sigmoid(gates[:, H_p:2 * H_p])
        o = jax.nn.sigmoid(gates[:, 2 * H_p:3 * H_p])
        g = jnp.tanh(gates[:, 3 * H_p:])
        c = f * c + i * g
        h = o * jnp.tanh(c)
        return (h, c), h.astype(jnp.bfloat16)

    init = (jnp.zeros((Tp1_p, H_p), jnp.float32),
            jnp.zeros((Tp1_p, H_p), jnp.float32))
    _, hs = jax.lax.scan(step, init, xg)                         # (B, Tp1_p, H_p)
    logits = (jnp.dot(hs.reshape(B * Tp1_p, H_p), packed["w_out"],
                      preferred_element_type=jnp.float32) + packed["b_out"])
    return logits.reshape(B, Tp1_p, V_p)[:, :T, :V]


def init_params(key, embed_size, hidden_size, vocab_size):
    ks = jax.random.split(key, 7)
    s = 0.1
    return {
        # nn.Embedding(vocab, embed): (V, E)
        "embed":   s * jax.random.normal(ks[0], (vocab_size, embed_size), jnp.float32),
        # nn.LSTM weight_ih_l0 (4H, E) stored transposed (E, 4H), gate order i,f,g,o
        "w_ih_t":  s * jax.random.normal(ks[1], (embed_size, 4 * hidden_size), jnp.float32),
        # weight_hh_l0 (4H, H) -> transposed (H, 4H)
        "w_hh_t":  s * jax.random.normal(ks[2], (hidden_size, 4 * hidden_size), jnp.float32),
        # bias_ih_l0 + bias_hh_l0 folded, shape (1, 4H)
        "b":       s * jax.random.normal(ks[3], (1, 4 * hidden_size), jnp.float32),
        # nn.Linear(hidden, vocab) weight (V, H) -> transposed (H, V)
        "w_out_t": s * jax.random.normal(ks[4], (hidden_size, vocab_size), jnp.float32),
        "b_out":   s * jax.random.normal(ks[5], (1, vocab_size), jnp.float32),
    }


if __name__ == "__main__":
    B, T = 2, 8
    embed_size, hidden_size, vocab_size = 32, 32, 64

    key = jax.random.PRNGKey(0)
    k_params, k_feat, k_cap = jax.random.split(key, 3)

    params = init_params(k_params, embed_size, hidden_size, vocab_size)
    features = jax.random.normal(k_feat, (B, embed_size), jnp.float32)
    captions = jax.random.randint(k_cap, (B, T), 0, vocab_size, jnp.int32)

    packed, dims = pack_params(params, embed_size, hidden_size, vocab_size)
    forward = make_decoder_forward(dims)    # recurrence_row_slabs=2 on v7x

    out = jax.block_until_ready(forward(features, captions, packed))
    ref = jax.block_until_ready(reference_forward(features, captions, packed, dims))

    assert out.shape == (B, T, vocab_size), out.shape
    np.testing.assert_allclose(np.asarray(out), np.asarray(ref), rtol=1e-3, atol=1e-3)

    print("KERNEL_OK")
</pallas_src>

<mosaic_0001>
module attributes {stable_mosaic.version = 11 : i64} {
  func.func @matmul_bias_kernel(%arg0: i32, %arg1: i32, %arg2: memref<32x128xbf16, #tpu.memory_space<vmem>>, %arg3: memref<128x128xbf16, #tpu.memory_space<vmem>>, %arg4: memref<1x128xf32, #tpu.memory_space<vmem>>, %arg5: memref<32x128xf32, #tpu.memory_space<vmem>>) attributes {dimension_semantics = [#tpu.dimension_semantics<parallel>, #tpu.dimension_semantics<parallel>], iteration_bounds = array<i64: 1, 1>, scalar_prefetch = 0 : i64, scratch_operands = 0 : i64, tpu.core_type = #tpu.core_type<tc>, window_params = [{transform_indices = @transform_0, window_bounds = array<i64: 32, 128>}, {transform_indices = @transform_1, window_bounds = array<i64: 128, 128>}, {transform_indices = @transform_2, window_bounds = array<i64: 1, 128>}, {transform_indices = @transform_3, window_bounds = array<i64: 32, 128>}]} {
    %c0 = arith.constant 0 : index
    %c0_0 = arith.constant 0 : index
    %0 = vector.load %arg2[%c0, %c0_0] : memref<32x128xbf16, #tpu.memory_space<vmem>>, vector<32x128xbf16>
    %c0_1 = arith.constant 0 : index
    %c0_2 = arith.constant 0 : index
    %1 = vector.load %arg3[%c0_1, %c0_2] : memref<128x128xbf16, #tpu.memory_space<vmem>>, vector<128x128xbf16>
    %cst = arith.constant dense<0.000000e+00> : vector<32x128xf32>
    %2 = tpu.matmul %0, %1, %cst {dimension_numbers = #tpu.dot_dimension_numbers<[1], [0], [0], [1], [0, 0, 1, 1], [], []>} : vector<32x128xbf16>, vector<128x128xbf16>, vector<32x128xf32> -> vector<32x128xf32>
    %c0_3 = arith.constant 0 : index
    %c0_4 = arith.constant 0 : index
    %3 = vector.load %arg4[%c0_3, %c0_4] : memref<1x128xf32, #tpu.memory_space<vmem>>, vector<1x128xf32>
    %4 = vector.broadcast %3 : vector<1x128xf32> to vector<32x128xf32>
    %5 = arith.addf %2, %4 : vector<32x128xf32>
    %c0_5 = arith.constant 0 : index
    %c0_6 = arith.constant 0 : index
    %6 = vector.load %arg5[%c0_5, %c0_6] : memref<32x128xf32, #tpu.memory_space<vmem>>, vector<32x128xf32>
    tpu.vector_store %arg5[%c0_5, %c0_6], %5 {strides = array<i32>} : memref<32x128xf32, #tpu.memory_space<vmem>>, vector<32x128xf32>,
    return
  }
  func.func @transform_0(%arg0: i32, %arg1: i32) -> (i32, i32) {
    %c0_i32 = arith.constant 0 : i32
    %c0_i32_0 = arith.constant 0 : i32
    return %arg1, %c0_i32 : i32, i32
  }
  func.func @transform_1(%arg0: i32, %arg1: i32) -> (i32, i32) {
    %c0_i32 = arith.constant 0 : i32
    %c0_i32_0 = arith.constant 0 : i32
    return %c0_i32, %arg0 : i32, i32
  }
  func.func @transform_2(%arg0: i32, %arg1: i32) -> (i32, i32) {
    %c0_i32 = arith.constant 0 : i32
    %c0_i32_0 = arith.constant 0 : i32
    return %c0_i32, %arg0 : i32, i32
  }
  func.func @transform_3(%arg0: i32, %arg1: i32) -> (i32, i32) {
    %c0_i32 = arith.constant 0 : i32
    return %arg1, %arg0 : i32, i32
  }
}

module attributes {stable_mosaic.version = 11 : i64} {
  func.func @matmul_bias_kernel(%arg0: i32, %arg1: i32, %arg2: memref<32x128xbf16, #tpu.memory_space<vmem>>, %arg3: memref<128x512xbf16, #tpu.memory_space<vmem>>, %arg4: memref<1x512xf32, #tpu.memory_space<vmem>>, %arg5: memref<32x512xf32, #tpu.memory_space<vmem>>) attributes {dimension_semantics = [#tpu.dimension_semantics<parallel>, #tpu.dimension_semantics<parallel>], iteration_bounds = array<i64: 1, 1>, scalar_prefetch = 0 : i64, scratch_operands = 0 : i64, tpu.core_type = #tpu.core_type<tc>, window_params = [{transform_indices = @transform_0, window_bounds = array<i64: 32, 128>}, {transform_indices = @transform_1, window_bounds = array<i64: 128, 512>}, {transform_indices = @transform_2, window_bounds = array<i64: 1, 512>}, {transform_indices = @transform_3, window_bounds = array<i64: 32, 512>}]} {
    %c0 = arith.constant 0 : index
    %c0_0 = arith.constant 0 : index
    %0 = vector.load %arg2[%c0, %c0_0] : memref<32x128xbf16, #tpu.memory_space<vmem>>, vector<32x128xbf16>
    %c0_1 = arith.constant 0 : index
    %c0_2 = arith.constant 0 : index
    %1 = vector.load %arg3[%c0_1, %c0_2] : memref<128x512xbf16, #tpu.memory_space<vmem>>, vector<128x512xbf16>
    %cst = arith.constant dense<0.000000e+00> : vector<32x512xf32>
    %2 = tpu.matmul %0, %1, %cst {dimension_numbers = #tpu.dot_dimension_numbers<[1], [0], [0], [1], [0, 0, 1, 1], [], []>} : vector<32x128xbf16>, vector<128x512xbf16>, vector<32x512xf32> -> vector<32x512xf32>
    %c0_3 = arith.constant 0 : index
    %c0_4 = arith.constant 0 : index
    %3 = vector.load %arg4[%c0_3, %c0_4] : memref<1x512xf32, #tpu.memory_space<vmem>>, vector<1x512xf32>
    %4 = vector.broadcast %3 : vector<1x512xf32> to vector<32x512xf32>
    %5 = arith.addf %2, %4 : vector<32x512xf32>
    %c0_5 = arith.constant 0 : index
    %c0_6 = arith.constant 0 : index
    %6 = vector.load %arg5[%c0_5, %c0_6] : memref<32x512xf32, #tpu.memory_space<vmem>>, vector<32x512xf32>
    tpu.vector_store %arg5[%c0_5, %c0_6], %5 {strides = array<i32>} : memref<32x512xf32, #tpu.memory_space<vmem>>, vector<32x512xf32>,
    return
  }
  func.func @transform_0(%arg0: i32, %arg1: i32) -> (i32, i32) {
    %c0_i32 = arith.constant 0 : i32
    %c0_i32_0 = arith.constant 0 : i32
    return %arg1, %c0_i32 : i32, i32
  }
  func.func @transform_1(%arg0: i32, %arg1: i32) -> (i32, i32) {
    %c0_i32 = arith.constant 0 : i32
    %c0_i32_0 = arith.constant 0 : i32
    return %c0_i32, %arg0 : i32, i32
  }
  func.func @transform_2(%arg0: i32, %arg1: i32) -> (i32, i32) {
    %c0_i32 = arith.constant 0 : i32
    %c0_i32_0 = arith.constant 0 : i32
    return %c0_i32, %arg0 : i32, i32
  }
  func.func @transform_3(%arg0: i32, %arg1: i32) -> (i32, i32) {
    %c0_i32 = arith.constant 0 : i32
    return %arg1, %arg0 : i32, i32
  }
}

module attributes {stable_mosaic.version = 11 : i64} {
  func.func @lstm_recurrence_kernel(%arg0: i32, %arg1: memref<2x16x512xf32, #tpu.memory_space<vmem>>, %arg2: memref<128x512xbf16, #tpu.memory_space<vmem>>, %arg3: memref<2x16x128xbf16, #tpu.memory_space<vmem>>, %arg4: memref<16x128xf32, #tpu.memory_space<vmem>>, %arg5: memref<16x128xf32, #tpu.memory_space<vmem>>) attributes {dimension_semantics = [#tpu.dimension_semantics<parallel>], iteration_bounds = array<i64: 1>, scalar_prefetch = 0 : i64, scratch_operands = 2 : i64, tpu.core_type = #tpu.core_type<tc>, window_params = [{transform_indices = @transform_0, window_bounds = array<i64: 2, 16, 512>}, {pipeline_mode = #tpu.pipeline_mode<synchronous>, transform_indices = @transform_1, window_bounds = array<i64: 128, 512>}, {transform_indices = @transform_2, window_bounds = array<i64: 2, 16, 128>}]} {
    %cst = arith.constant 0.000000e+00 : f32
    %0 = vector.broadcast %cst : f32 to vector<16x128xf32>
    %c0 = arith.constant 0 : index
    %c0_0 = arith.constant 0 : index
    %1 = vector.load %arg4[%c0, %c0_0] : memref<16x128xf32, #tpu.memory_space<vmem>>, vector<16x128xf32>
    tpu.vector_store %arg4[%c0, %c0_0], %0 {strides = array<i32>} : memref<16x128xf32, #tpu.memory_space<vmem>>, vector<16x128xf32>,
    %cst_1 = arith.constant 0.000000e+00 : f32
    %2 = vector.broadcast %cst_1 : f32 to vector<16x128xf32>
    %c0_2 = arith.constant 0 : index
    %c0_3 = arith.constant 0 : index
    %3 = vector.load %arg5[%c0_2, %c0_3] : memref<16x128xf32, #tpu.memory_space<vmem>>, vector<16x128xf32>
    tpu.vector_store %arg5[%c0_2, %c0_3], %2 {strides = array<i32>} : memref<16x128xf32, #tpu.memory_space<vmem>>, vector<16x128xf32>,
    %c0_i32 = arith.constant 0 : i32
    %c2_i32 = arith.constant 2 : i32
    %4 = arith.addi %c0_i32, %c2_i32 : i32
    %c1_i32 = arith.constant 1 : i32
    scf.for %arg6 = %c0_i32 to %4 step %c1_i32  : i32 {
      %c1_i32_5 = arith.constant 1 : i32
      %5 = arith.muli %arg6, %c1_i32_5 : i32
      %c0_i32_6 = arith.constant 0 : i32
      %6 = arith.addi %c0_i32_6, %5 : i32
      %7 = arith.index_cast %6 : i32 to index
      %c0_7 = arith.constant 0 : index
      %c0_8 = arith.constant 0 : index
      %8 = vector.load %arg1[%7, %c0_7, %c0_8] : memref<2x16x512xf32, #tpu.memory_space<vmem>>, vector<1x16x512xf32>
      %9 = vector.shape_cast %8 : vector<1x16x512xf32> to vector<16x512xf32>
      %c0_9 = arith.constant 0 : index
      %c0_10 = arith.constant 0 : index
      %10 = vector.load %arg4[%c0_9, %c0_10] : memref<16x128xf32, #tpu.memory_space<vmem>>, vector<16x128xf32>
      %11 = arith.truncf %10 : vector<16x128xf32> to vector<16x128xbf16>
      %c0_11 = arith.constant 0 : index
      %c0_12 = arith.constant 0 : index
      %12 = vector.load %arg2[%c0_11, %c0_12] : memref<128x512xbf16, #tpu.memory_space<vmem>>, vector<128x512xbf16>
      %cst_13 = arith.constant dense<0.000000e+00> : vector<16x512xf32>
      %13 = tpu.matmul %11, %12, %cst_13 {dimension_numbers = #tpu.dot_dimension_numbers<[1], [0], [0], [1], [0, 0, 1, 1], [], []>} : vector<16x128xbf16>, vector<128x512xbf16>, vector<16x512xf32> -> vector<16x512xf32>
      %14 = arith.addf %9, %13 : vector<16x512xf32>
      %15 = vector.extract_strided_slice %14 {offsets = [0, 0], sizes = [16, 384], strides = [1, 1]} : vector<16x512xf32> to vector<16x384xf32>
      %16 = arith.negf %15 : vector<16x384xf32>
      %17 = math.exp %16 : vector<16x384xf32>
      %cst_14 = arith.constant 1.000000e+00 : f32
      %18 = vector.broadcast %cst_14 : f32 to vector<16x384xf32>
      %19 = arith.addf %18, %17 : vector<16x384xf32>
      %20 = arith.divf %18, %19 : vector<16x384xf32>
      %21 = vector.extract_strided_slice %14 {offsets = [0, 384], sizes = [16, 128], strides = [1, 1]} : vector<16x512xf32> to vector<16x128xf32>
      %22 = math.tanh %21 : vector<16x128xf32>
      %23 = vector.extract_strided_slice %20 {offsets = [0, 0], sizes = [16, 128], strides = [1, 1]} : vector<16x384xf32> to vector<16x128xf32>
      %24 = vector.extract_strided_slice %20 {offsets = [0, 128], sizes = [16, 128], strides = [1, 1]} : vector<16x384xf32> to vector<16x128xf32>
      %25 = vector.extract_strided_slice %20 {offsets = [0, 256], sizes = [16, 128], strides = [1, 1]} : vector<16x384xf32> to vector<16x128xf32>
      %c0_15 = arith.constant 0 : index
      %c0_16 = arith.constant 0 : index
      %26 = vector.load %arg5[%c0_15, %c0_16] : memref<16x128xf32, #tpu.memory_space<vmem>>, vector<16x128xf32>
      %27 = arith.mulf %24, %26 : vector<16x128xf32>
      %28 = arith.mulf %23, %22 : vector<16x128xf32>
      %29 = arith.addf %27, %28 : vector<16x128xf32>
      %30 = math.tanh %29 : vector<16x128xf32>
      %31 = arith.mulf %25, %30 : vector<16x128xf32>
      %c0_17 = arith.constant 0 : index
      %c0_18 = arith.constant 0 : index
      %32 = vector.load %arg5[%c0_17, %c0_18] : memref<16x128xf32, #tpu.memory_space<vmem>>, vector<16x128xf32>
      tpu.vector_store %arg5[%c0_17, %c0_18], %29 {strides = array<i32>} : memref<16x128xf32, #tpu.memory_space<vmem>>, vector<16x128xf32>,
      %c0_19 = arith.constant 0 : index
      %c0_20 = arith.constant 0 : index
      %33 = vector.load %arg4[%c0_19, %c0_20] : memref<16x128xf32, #tpu.memory_space<vmem>>, vector<16x128xf32>
      tpu.vector_store %arg4[%c0_19, %c0_20], %31 {strides = array<i32>} : memref<16x128xf32, #tpu.memory_space<vmem>>, vector<16x128xf32>,
      %34 = arith.truncf %31 : vector<16x128xf32> to vector<16x128xbf16>
      %35 = arith.index_cast %6 : i32 to index
      %c0_21 = arith.constant 0 : index
      %c0_22 = arith.constant 0 : index
      %36 = vector.load %arg3[%35, %c0_21, %c0_22] : memref<2x16x128xbf16, #tpu.memory_space<vmem>>, vector<1x16x128xbf16>
      %37 = vector.shape_cast %36 : vector<1x16x128xbf16> to vector<16x128xbf16>
      %38 = vector.shape_cast %34 : vector<16x128xbf16> to vector<1x16x128xbf16>
      tpu.vector_store %arg3[%35, %c0_21, %c0_22], %38 {strides = array<i32>} : memref<2x16x128xbf16, #tpu.memory_space<vmem>>, vector<1x16x128xbf16>,
    }
    %c2_i32_4 = arith.constant 2 : i32
    return
  }
  func.func @transform_0(%arg0: i32) -> (i32, i32, i32) {
    %c0_i32 = arith.constant 0 : i32
    %c0_i32_0 = arith.constant 0 : i32
    %c0_i32_1 = arith.constant 0 : i32
    return %c0_i32, %arg0, %c0_i32_0 : i32, i32, i32
  }
  func.func @transform_1(%arg0: i32) -> (i32, i32) {
    %c0_i32 = arith.constant 0 : i32
    %c0_i32_0 = arith.constant 0 : i32
    %c0_i32_1 = arith.constant 0 : i32
    return %c0_i32, %c0_i32_0 : i32, i32
  }
  func.func @transform_2(%arg0: i32) -> (i32, i32, i32) {
    %c0_i32 = arith.constant 0 : i32
    %c0_i32_0 = arith.constant 0 : i32
    %c0_i32_1 = arith.constant 0 : i32
    return %c0_i32, %arg0, %c0_i32_0 : i32, i32, i32
  }
}

</mosaic_0001>

<bundles_post_ra>
// kernel: forward.5
= control target key start
LH: loop header
LB: loop body
LE: loop exit
PB: predicated region body
PF: predicated region fallthrough
CT: control target
= control target key end

     0   :  { %s275_s1 = inlined_call_operand.vmem [shape: bf16[128,128], index: 1, kind: input, shape index: {}]   ;;  %s276_s0 = inlined_call_operand.vmem [shape: bf16[32,128], index: 0, kind: input, shape index: {}]   ;;  %s277_s2 = inlined_call_operand.vmem [shape: f32[1,128], index: 2, kind: input, shape index: {}]   ;;  %s278_s3 = inlined_call_operand.vmem [shape: f32[32,128], index: 3, kind: output, shape index: {}]  }
   0x1   :  { %v200_v0 = vld [vmem:[%s275_s1] sm:$0xff]   ;;  %v201_v1 = vld [vmem:[%s275_s1 + $0x8] sm:$0xff]   ;;  %v202_v2 = vld [vmem:[%s275_s1 + $0x10] sm:$0xff]  }
   0x2   :  { %180 = vmatprep.subr.bf16.mxu0 %v200_v0  ;;  %v203_v3 = vld [vmem:[%s275_s1 + $0x18] sm:$0xff]   ;;  %v208_v4 = vld [vmem:[%s276_s0] sm:$0xff]   ;;  %v205_v6 = vld [vmem:[%s275_s1 + $0x28] sm:$0xff]  }
   0x3   :  { %181 = vmatpush3.bf16.msra.mxu0 %v200_v0  ;;  %196 = vmatprep.mubr.bf16.mxu0 %v208_v4  ;;  %v204_v5 = vld [vmem:[%s275_s1 + $0x20] sm:$0xff]   ;;  %v206_v7 = vld [vmem:[%s275_s1 + $0x30] sm:$0xff]   ;;  %v207_v8 = vld [vmem:[%s275_s1 + $0x38] sm:$0xff]  }
   0x4   :  { %182 = vmatprep.subr.bf16.mxu0 %v201_v1  ;;  %v209_v9 = vld [vmem:[%s276_s0 + $0x8] sm:$0xff]   ;;  %v159_v10 = vld [vmem:[%s277_s2] ss:$0 sm:$0xff] }
   0x7   :  { %183 = vmatpush3.bf16.msra.mxu0 %v201_v1 }
   0x8   :  { %184 = vmatprep.subr.bf16.mxu0 %v202_v2 }
   0xb   :  { %185 = vmatpush3.bf16.msra.mxu0 %v202_v2 }
   0xc   :  { %186 = vmatprep.subr.bf16.mxu0 %v203_v3 }
   0xf   :  { %187 = vmatpush3.bf16.msra.mxu0 %v203_v3 }
  0x10   :  { %188 = vmatprep.subr.bf16.mxu0 %v204_v5 }
  0x13   :  { %189 = vmatpush3.bf16.msra.mxu0 %v204_v5 }
  0x14   :  { %190 = vmatprep.subr.bf16.mxu0 %v205_v6 }
  0x17   :  { %191 = vmatpush3.bf16.msra.mxu0 %v205_v6 }
  0x18   :  { %192 = vmatprep.subr.bf16.mxu0 %v206_v7 }
  0x1b   :  { %193 = vmatpush3.bf16.msra.mxu0 %v206_v7 }
  0x1c   :  { %194 = vmatprep.subr.bf16.mxu0 %v207_v8 }
  0x1f   :  { %195 = vmatpush3.bf16.msra.mxu0 %v207_v8 }
  0x22   :  { %197 = vmatmul.mubr.bf16.vlgmr.msra.gmra.mrb[0].mxu0 %v209_v9 }
  0xf5   :  { %v198_v11 = vpop.f32.mrb[0].mxu0 }
  0xf6   :  { %v145_v12 = vadd.f32 %v198_v11, %v159_v10  ;;  %v136_v13 = vpop.f32.mrb[1].mxu0 }
  0xf7   :  { %v137_v14 = vadd.f32 %v159_v10, %v136_v13  ;;  %v199_v15 = vpop.f32.mrb[2].mxu0 }
  0xf8   :  { %153 = vst [vmem:[%s278_s3 + $0x10] sm:$0xff] %v145_v12  ;;  %v148_v16 = vadd.f32 %v199_v15, %v159_v10  ;;  %v139_v17 = vpop.f32.mrb[3].mxu0 }
  0xf9   :  { %151 = vst [vmem:[%s278_s3] sm:$0xff] %v137_v14  ;;  %v140_v18 = vadd.f32 %v159_v10, %v139_v17 }
  0xfa   :  { %154 = vst [vmem:[%s278_s3 + $0x18] sm:$0xff] %v148_v16 }
  0xfb   :  { %152 = vst [vmem:[%s278_s3 + $0x8] sm:$0xff] %v140_v18 }

// kernel: forward.3
= control target key start
LH: loop header
LB: loop body
LE: loop exit
PB: predicated region body
PF: predicated region fallthrough
CT: control target
= control target key end

     0   :  { %8 = vsyncpa [#allocation3], 0  ;;  %s498_s12 = smov [#allocation2]   ;;  %s595_s0 = inlined_call_operand.vmem [shape: bf16[32,128], index: 0, kind: input, shape index: {}]   ;;  %s596_s1 = inlined_call_operand.hbm [shape: bf16[128,512], index: 1, kind: input, shape index: {}]   ;;  %s597_s2 = inlined_call_operand.vmem [shape: f32[1,512], index: 2, kind: input, shape index: {}]   ;;  %s598_s3 = inlined_call_operand.vmem [shape: f32[32,512], index: 3, kind: output, shape index: {}]  }
   0x1   :  { %s16_s13 = sshll.u32 %s498_s12, 4  ;;  %s474_s16 = scalar_lea.hbm %s596_s1, 4096  ;;  %s17_s13 = int_to_ptr.vmem [resolvable:$true] %s16_s13 }
   0x2   :  { %p475_p0 = scmp.ne.s32.totalorder %s596_s1, %s474_s16  ;;  %p478_p1 = scmp.lt.u32.totalorder %s474_s16, %s596_s1 }
   0x4   :  { %p480_p2 = pnand %p478_p1, %p475_p0 }
   0x6   :  { %483 = shalt.err (!%p480_p2)
}
   0x7   :  { %s484_s21 = scalar_lea.vmem %s17_s13, 4096  ;;  %p489_p4 = scmp.lt.s32.totalorder %s17_s13, %s17_s13 }
   0x8   :  { %p485_p3 = scmp.ne.s32.totalorder %s17_s13, %s484_s21  ;;  %p490_p5 = scmp.lt.s32.totalorder %s484_s21, %s484_s21 }
   0xa   :  { %p491_p6 = por %p490_p5, %p489_p4 }
   0xc   :  { %p492_p7 = pnand %p491_p6, %p485_p3 }
   0xe   :  { %495 = shalt.err (!%p492_p7)
}
   0xf   :  { %s499_s22 = smov 256   ;;  %s500_s23 = smov 16  }
  0x10   :  { %22 = dma.hbm_to_vmem [thread:$0]  %s596_s1, 4096, %s17_s13, [#allocation3], %s499_s22, %s499_s22, %s500_s23  }
  0x11   :  { %496 = dma.done.wait [#allocation3], 4096  }
  0x12   :  { %497 = vsyncadd [#allocation3], 4294963200  ;;  %v501_v0 = vmov 0   ;;  %v424_v1 = vld [vmem:[#allocation2 + $0x4] ss:$16 sps:$4 sm:$0xff]   ;;  %v473_v34 = vld [vmem:[%s595_s0 + $0x8] sm:$0xff]   ;;  %v67_v35 = vlaneseq }
  0x13   :  { %291 = vmatprep.mubr.bf16.mxu0 %v501_v0  ;;  %344 = vmatprep.mubr.bf16.mxu1 %v501_v0  ;;  %v426_v2 = vld [vmem:[#allocation2 + $0xc] ss:$16 sps:$4 sm:$0xff]   ;;  %v428_v3 = vld [vmem:[#allocation2] ss:$16 sps:$4 sm:$0xff]   ;;  %v429_v4 = vld [vmem:[#allocation2 + $0x8] ss:$16 sps:$4 sm:$0xff]  }
  0x14   :  { %259 = vmatprep.subr.bf16.mxu0 %v424_v1  ;;  %312 = vmatprep.subr.bf16.mxu1 %v426_v2  ;;  %v430_v5 = vld [vmem:[#allocation2 + $0x24] ss:$16 sps:$4 sm:$0xff]   ;;  %v432_v6 = vld [vmem:[#allocation2 + $0x2c] ss:$16 sps:$4 sm:$0xff]   ;;  %v434_v7 = vld [vmem:[#allocation2 + $0x20] ss:$16 sps:$4 sm:$0xff]  }
  0x15   :  { %260 = vmatpush1.bf16.msra.mxu0 %v428_v3  ;;  %313 = vmatpush1.bf16.msra.mxu1 %v429_v4  ;;  %v435_v8 = vld [vmem:[#allocation2 + $0x28] ss:$16 sps:$4 sm:$0xff]   ;;  %v436_v9 = vld [vmem:[#allocation2 + $0x44] ss:$16 sps:$4 sm:$0xff]   ;;  %v438_v10 = vld [vmem:[#allocation2 + $0x4c] ss:$16 sps:$4 sm:$0xff]  }
  0x16   :  { %261 = vmatprep.subr.bf16.mxu0 %v430_v5  ;;  %314 = vmatprep.subr.bf16.mxu1 %v432_v6  ;;  %v440_v11 = vld [vmem:[#allocation2 + $0x40] ss:$16 sps:$4 sm:$0xff]   ;;  %v441_v12 = vld [vmem:[#allocation2 + $0x48] ss:$16 sps:$4 sm:$0xff]   ;;  %v442_v13 = vld [vmem:[#allocation2 + $0x64] ss:$16 sps:$4 sm:$0xff]  }
  0x17   :  { %v444_v14 = vld [vmem:[#allocation2 + $0x6c] ss:$16 sps:$4 sm:$0xff]   ;;  %v446_v15 = vld [vmem:[#allocation2 + $0x60] ss:$16 sps:$4 sm:$0xff]   ;;  %v447_v16 = vld [vmem:[#allocation2 + $0x68] ss:$16 sps:$4 sm:$0xff]  }
  0x18   :  { %v448_v17 = vld [vmem:[#allocation2 + $0x84] ss:$16 sps:$4 sm:$0xff]   ;;  %v450_v18 = vld [vmem:[#allocation2 + $0x8c] ss:$16 sps:$4 sm:$0xff]   ;;  %v452_v19 = vld [vmem:[#allocation2 + $0x80] ss:$16 sps:$4 sm:$0xff]  }
  0x19   :  { %262 = vmatpush1.bf16.msra.mxu0 %v434_v7  ;;  %315 = vmatpush1.bf16.msra.mxu1 %v435_v8  ;;  %v453_v20 = vld [vmem:[#allocation2 + $0x88] ss:$16 sps:$4 sm:$0xff]   ;;  %v454_v21 = vld [vmem:[#allocation2 + $0xa4] ss:$16 sps:$4 sm:$0xff]   ;;  %v456_v22 = vld [vmem:[#allocation2 + $0xac] ss:$16 sps:$4 sm:$0xff]  }
  0x1a   :  { %263 = vmatprep.subr.bf16.mxu0 %v436_v9  ;;  %316 = vmatprep.subr.bf16.mxu1 %v438_v10  ;;  %v458_v23 = vld [vmem:[#allocation2 + $0xa0] ss:$16 sps:$4 sm:$0xff]   ;;  %v459_v24 = vld [vmem:[#allocation2 + $0xa8] ss:$16 sps:$4 sm:$0xff]   ;;  %v460_v25 = vld [vmem:[#allocation2 + $0xc4] ss:$16 sps:$4 sm:$0xff]  }
  0x1b   :  { %v462_v26 = vld [vmem:[#allocation2 + $0xcc] ss:$16 sps:$4 sm:$0xff]   ;;  %v464_v27 = vld [vmem:[#allocation2 + $0xc0] ss:$16 sps:$4 sm:$0xff]   ;;  %v465_v28 = vld [vmem:[#allocation2 + $0xc8] ss:$16 sps:$4 sm:$0xff]  }
  0x1c   :  { %v466_v29 = vld [vmem:[#allocation2 + $0xe4] ss:$16 sps:$4 sm:$0xff]   ;;  %v468_v30 = vld [vmem:[#allocation2 + $0xec] ss:$16 sps:$4 sm:$0xff]   ;;  %v470_v31 = vld [vmem:[#allocation2 + $0xe0] ss:$16 sps:$4 sm:$0xff]  }
  0x1d   :  { %264 = vmatpush1.bf16.msra.mxu0 %v440_v11  ;;  %317 = vmatpush1.bf16.msra.mxu1 %v441_v12  ;;  %v471_v32 = vld [vmem:[#allocation2 + $0xe8] ss:$16 sps:$4 sm:$0xff]   ;;  %v472_v33 = vld [vmem:[%s595_s0] sm:$0xff]   ;;  %v68_v36 = vshrl.u32 %v67_v35, 7 }
  0x1e   :  { %265 = vmatprep.subr.bf16.mxu0 %v442_v13  ;;  %318 = vmatprep.subr.bf16.mxu1 %v444_v14  ;;  %v65_v39 = vld [vmem:[%s597_s2] sm:$0xf] }
  0x1f   :  { %v69_v37 = vsub.s32 0, %v68_v36  ;;  %v77_v38 = vsub.s32 2, %v68_v36  ;;  %v73_v40 = vsub.s32 1, %v68_v36  ;;  %v81_v41 = vsub.s32 3, %v68_v36 }
  0x21   :  { %266 = vmatpush1.bf16.msra.mxu0 %v446_v15  ;;  %319 = vmatpush1.bf16.msra.mxu1 %v447_v16  ;;  %v70_v42 = vrot.slane %v65_v39, %v69_v37  ;;  %v78_v43 = vrot.slane %v65_v39, %v77_v38  ;;  %v74_v44 = vrot.slane %v65_v39, %v73_v40 }
  0x22   :  { %267 = vmatprep.subr.bf16.mxu0 %v448_v17  ;;  %320 = vmatprep.subr.bf16.mxu1 %v450_v18  ;;  %v82_v45 = vrot.slane %v65_v39, %v81_v41 }
  0x25   :  { %268 = vmatpush1.bf16.msra.mxu0 %v452_v19  ;;  %321 = vmatpush1.bf16.msra.mxu1 %v453_v20 }
  0x26   :  { %269 = vmatprep.subr.bf16.mxu0 %v454_v21  ;;  %322 = vmatprep.subr.bf16.mxu1 %v456_v22 }
  0x29   :  { %270 = vmatpush1.bf16.msra.mxu0 %v458_v23  ;;  %323 = vmatpush1.bf16.msra.mxu1 %v459_v24 }
  0x2a   :  { %271 = vmatprep.subr.bf16.mxu0 %v460_v25  ;;  %324 = vmatprep.subr.bf16.mxu1 %v462_v26 }
  0x2d   :  { %272 = vmatpush1.bf16.msra.mxu0 %v464_v27  ;;  %325 = vmatpush1.bf16.msra.mxu1 %v465_v28 }
  0x2e   :  { %273 = vmatprep.subr.bf16.mxu0 %v466_v29  ;;  %326 = vmatprep.subr.bf16.mxu1 %v468_v30 }
  0x31   :  { %274 = vmatpush1.bf16.msra.mxu0 %v470_v31  ;;  %327 = vmatpush1.bf16.msra.mxu1 %v471_v32 }
  0x34   :  { %292 = vmatmul.mubr.bf16.vlgmr.msra.gmra.mrb[0].mxu0 %v472_v33  ;;  %345 = vmatmul.mubr.bf16.vlgmr.msra.gmra.mrb[0].mxu1 %v472_v33 }
  0x35   :  { %301 = vmatprep.mubr.bf16.mxu0 %v501_v0  ;;  %354 = vmatprep.mubr.bf16.mxu1 %v501_v0 }
  0x3c   :  { %302 = vmatmul.mubr.bf16.gmra.mrb[4].mxu0 %v473_v34  ;;  %355 = vmatmul.mubr.bf16.gmra.mrb[4].mxu1 %v473_v34 }
 0x107   :  { %v293_v46 = vpop.f32.mrb[0].mxu0  ;;  %v346_v47 = vpop.f32.mrb[0].mxu1 }
 0x108   :  { %v294_v48 = vadd.f32 %v293_v46, %v70_v42  ;;  %v347_v49 = vadd.f32 %v346_v47, %v78_v43  ;;  %v295_v50 = vpop.f32.mrb[1].mxu0  ;;  %v348_v51 = vpop.f32.mrb[1].mxu1 }
 0x109   :  { %v296_v52 = vadd.f32 %v295_v50, %v74_v44  ;;  %v349_v53 = vadd.f32 %v348_v51, %v82_v45  ;;  %v297_v54 = vpop.f32.mrb[2].mxu0  ;;  %v350_v55 = vpop.f32.mrb[2].mxu1 }
 0x10a   :  { %365 = vst [vmem:[%s598_s3] sm:$0xff] %v294_v48  ;;  %367 = vst [vmem:[%s598_s3 + $0x10] sm:$0xff] %v347_v49  ;;  %v298_v56 = vadd.f32 %v297_v54, %v70_v42  ;;  %v351_v57 = vadd.f32 %v350_v55, %v78_v43  ;;  %v299_v58 = vpop.f32.mrb[3].mxu0  ;;  %v352_v59 = vpop.f32.mrb[3].mxu1 }
 0x10b   :  { %366 = vst [vmem:[%s598_s3 + $0x8] sm:$0xff] %v296_v52  ;;  %368 = vst [vmem:[%s598_s3 + $0x18] sm:$0xff] %v349_v53  ;;  %v300_v60 = vadd.f32 %v299_v58, %v74_v44  ;;  %v353_v61 = vadd.f32 %v352_v59, %v82_v45 }
 0x10c   :  { %369 = vst [vmem:[%s598_s3 + $0x20] sm:$0xff] %v298_v56  ;;  %371 = vst [vmem:[%s598_s3 + $0x30] sm:$0xff] %v351_v57 }
 0x10d   :  { %370 = vst [vmem:[%s598_s3 + $0x28] sm:$0xff] %v300_v60  ;;  %372 = vst [vmem:[%s598_s3 + $0x38] sm:$0xff] %v353_v61 }
 0x10f   :  { %v303_v62 = vpop.f32.mrb[4].mxu0  ;;  %v356_v63 = vpop.f32.mrb[4].mxu1 }
 0x110   :  { %v304_v0 = vadd.f32 %v303_v62, %v70_v42  ;;  %v357_v1 = vadd.f32 %v356_v63, %v78_v43  ;;  %v305_v2 = vpop.f32.mrb[5].mxu0  ;;  %v358_v3 = vpop.f32.mrb[5].mxu1 }
 0x111   :  { %v306_v4 = vadd.f32 %v305_v2, %v74_v44  ;;  %v359_v5 = vadd.f32 %v358_v3, %v82_v45  ;;  %v307_v6 = vpop.f32.mrb[6].mxu0  ;;  %v360_v7 = vpop.f32.mrb[6].mxu1 }
 0x112   :  { %373 = vst [vmem:[%s598_s3 + $0x40] sm:$0xff] %v304_v0  ;;  %375 = vst [vmem:[%s598_s3 + $0x50] sm:$0xff] %v357_v1  ;;  %v308_v8 = vadd.f32 %v307_v6, %v70_v42  ;;  %v361_v9 = vadd.f32 %v360_v7, %v78_v43  ;;  %v309_v10 = vpop.f32.mrb[7].mxu0  ;;  %v362_v11 = vpop.f32.mrb[7].mxu1 }
 0x113   :  { %374 = vst [vmem:[%s598_s3 + $0x48] sm:$0xff] %v306_v4  ;;  %376 = vst [vmem:[%s598_s3 + $0x58] sm:$0xff] %v359_v5  ;;  %v310_v12 = vadd.f32 %v309_v10, %v74_v44  ;;  %v363_v13 = vadd.f32 %v362_v11, %v82_v45 }
 0x114   :  { %377 = vst [vmem:[%s598_s3 + $0x60] sm:$0xff] %v308_v8  ;;  %379 = vst [vmem:[%s598_s3 + $0x70] sm:$0xff] %v361_v9 }
 0x115   :  { %378 = vst [vmem:[%s598_s3 + $0x68] sm:$0xff] %v310_v12  ;;  %380 = vst [vmem:[%s598_s3 + $0x78] sm:$0xff] %v363_v13 }
 0x116   :  { %385 = vsyncpa [#allocation3], 1 }

// kernel: forward.4
= control target key start
LH: loop header
LB: loop body
LE: loop exit
PB: predicated region body
PF: predicated region fallthrough
CT: control target
= control target key end

     0   :  { %v553_v0 = vmov 0.0   ;;  %s570_s9 = smov 0   ;;  %s682_s0 = inlined_call_operand.vmem [shape: f32[2,16,512], index: 0, kind: input, shape index: {}]   ;;  %s683_s1 = inlined_call_operand.vmem [shape: bf16[128,512], index: 1, kind: input, shape index: {}]   ;;  %s684_s2 = inlined_call_operand.vmem [shape: bf16[2,16,128], index: 2, kind: output, shape index: {}]  }
   0x1   :  { %12 = vst [vmem:[#allocation2] sm:$0xff] %v553_v0  ;;  %13 = vst [vmem:[#allocation2 + $0x8] sm:$0xff] %v553_v0 }
   0x2   :  { %14 = vst [vmem:[#allocation3] sm:$0xff] %v553_v0  ;;  %15 = vst [vmem:[#allocation3 + $0x8] sm:$0xff] %v553_v0 }
   0x3 LB: > { %v465_v1 = vld [vmem:[%s683_s1 + $0x4] ss:$16 sps:$4 sm:$0xff]   ;;  %v467_v2 = vld [vmem:[%s683_s1] ss:$16 sps:$4 sm:$0xff]   ;;  %v554_v3 = vmov 0   ;;  %s446_s20 = sshll.u32 %s551_s9, 6  ;;  %s551_s9 = sphi %s570_s9, %s21_s9  }
   0x4   : > { %260 = vmatprep.mubr.bf16.mxu0 %v554_v3  ;;  %303 = vmatprep.mubr.bf16.mxu1 %v554_v3  ;;  %v468_v4 = vld [vmem:[%s683_s1 + $0x24] ss:$16 sps:$4 sm:$0xff]   ;;  %v470_v5 = vld [vmem:[%s683_s1 + $0x20] ss:$16 sps:$4 sm:$0xff]   ;;  %v476_v7 = vld [vmem:[%s683_s1 + $0xc] ss:$16 sps:$4 sm:$0xff]   ;;  %s24_s23 = scalar_lea.vmem %s682_s0, %s446_s20 }
   0x5   : > { %228 = vmatprep.subr.bf16.mxu0 %v465_v1  ;;  %v471_v6 = vld [vmem:[%s683_s1 + $0x44] ss:$16 sps:$4 sm:$0xff]   ;;  %v479_v8 = vld [vmem:[%s683_s1 + $0x8] ss:$16 sps:$4 sm:$0xff]   ;;  %v473_v9 = vld [vmem:[%s683_s1 + $0x40] ss:$16 sps:$4 sm:$0xff]   ;;  %271 = vmatprep.subr.bf16.mxu1 %v476_v7 }
   0x6   : > { %229 = vmatpush1.bf16.msra.mxu0 %v467_v2  ;;  %v474_v10 = vld [vmem:[%s683_s1 + $0x64] ss:$16 sps:$4 sm:$0xff]   ;;  %272 = vmatpush1.bf16.msra.mxu1 %v479_v8  ;;  %v482_v11 = vld [vmem:[%s683_s1 + $0x2c] ss:$16 sps:$4 sm:$0xff]   ;;  %v485_v12 = vld [vmem:[%s683_s1 + $0x28] ss:$16 sps:$4 sm:$0xff]  }
   0x7   : > { %230 = vmatprep.subr.bf16.mxu0 %v468_v4  ;;  %273 = vmatprep.subr.bf16.mxu1 %v482_v11  ;;  %v478_v13 = vld [vmem:[%s683_s1 + $0x60] ss:$16 sps:$4 sm:$0xff]   ;;  %v480_v14 = vld [vmem:[%s683_s1 + $0x84] ss:$16 sps:$4 sm:$0xff]   ;;  %v488_v15 = vld [vmem:[%s683_s1 + $0x4c] ss:$16 sps:$4 sm:$0xff]  }
   0x8   : > { %v491_v16 = vld [vmem:[%s683_s1 + $0x48] ss:$16 sps:$4 sm:$0xff]   ;;  %v494_v17 = vld [vmem:[%s683_s1 + $0x6c] ss:$16 sps:$4 sm:$0xff]   ;;  %v484_v18 = vld [vmem:[%s683_s1 + $0x80] ss:$16 sps:$4 sm:$0xff]  }
   0x9   : > { %v486_v19 = vld [vmem:[%s683_s1 + $0xa4] ss:$16 sps:$4 sm:$0xff]   ;;  %v497_v20 = vld [vmem:[%s683_s1 + $0x68] ss:$16 sps:$4 sm:$0xff]   ;;  %v500_v21 = vld [vmem:[%s683_s1 + $0x8c] ss:$16 sps:$4 sm:$0xff]  }
   0xa   : > { %231 = vmatpush1.bf16.msra.mxu0 %v470_v5  ;;  %274 = vmatpush1.bf16.msra.mxu1 %v485_v12  ;;  %v490_v22 = vld [vmem:[%s683_s1 + $0xa0] ss:$16 sps:$4 sm:$0xff]   ;;  %v492_v23 = vld [vmem:[%s683_s1 + $0xc4] ss:$16 sps:$4 sm:$0xff]   ;;  %v503_v24 = vld [vmem:[%s683_s1 + $0x88] ss:$16 sps:$4 sm:$0xff]  }
   0xb   : > { %232 = vmatprep.subr.bf16.mxu0 %v471_v6  ;;  %275 = vmatprep.subr.bf16.mxu1 %v488_v15  ;;  %v504_v25 = vld [vmem:[%s683_s1 + $0xac] ss:$16 sps:$4 sm:$0xff]   ;;  %v496_v26 = vld [vmem:[%s683_s1 + $0xc0] ss:$16 sps:$4 sm:$0xff]   ;;  %v498_v27 = vld [vmem:[%s683_s1 + $0xe4] ss:$16 sps:$4 sm:$0xff]  }
   0xc   : > { %v506_v28 = vld [vmem:[%s683_s1 + $0xa8] ss:$16 sps:$4 sm:$0xff]   ;;  %v507_v29 = vld [vmem:[%s683_s1 + $0xcc] ss:$16 sps:$4 sm:$0xff]   ;;  %v502_v30 = vld [vmem:[%s683_s1 + $0xe0] ss:$16 sps:$4 sm:$0xff]  }
   0xd   : > { %v33_v31 = vld [vmem:[#allocation2] sm:$0xff]  ;;  %v34_v32 = vld [vmem:[#allocation2 + $0x8] sm:$0xff]  ;;  %v27_v51 = vld [vmem:[%s24_s23 + $0x10] sm:$0xff]  ;;  %s449_s24 = sshll.u32 %s551_s9, 3  ;;  %s21_s9 = sadd.s32 1, %s551_s9  }
   0xe   : > { %233 = vmatpush1.bf16.msra.mxu0 %v473_v9  ;;  %276 = vmatpush1.bf16.msra.mxu1 %v491_v16  ;;  %v509_v33 = vld [vmem:[%s683_s1 + $0xc8] ss:$16 sps:$4 sm:$0xff]   ;;  %v510_v34 = vld [vmem:[%s683_s1 + $0xec] ss:$16 sps:$4 sm:$0xff]   ;;  %v35_v35 = vpack.c.bf16 %v34_v32, %v33_v31  ;;  %v25_v37 = vld [vmem:[%s24_s23] sm:$0xff]  ;;  %s386_s27 = scalar_lea.vmem %s684_s2, %s449_s24  ;;  %p18_p0 = scmp.ge.s32.totalorder %s21_s9, 2  }
   0xf   : > { %234 = vmatprep.subr.bf16.mxu0 %v474_v10  ;;  %277 = vmatprep.subr.bf16.mxu1 %v494_v17  ;;  %v512_v36 = vld [vmem:[%s683_s1 + $0xe8] ss:$16 sps:$4 sm:$0xff]   ;;  %v29_v40 = vld [vmem:[%s24_s23 + $0x20] sm:$0xff]  ;;  %v31_v56 = vld [vmem:[%s24_s23 + $0x30] sm:$0xff] }
  0x10   : > { %v26_v38 = vld [vmem:[%s24_s23 + $0x8] sm:$0xff]  ;;  %v28_v58 = vld [vmem:[%s24_s23 + $0x18] sm:$0xff]  ;;  %v360_v15 = vld [vmem:[#allocation3] sm:$0xff] }
  0x11   : > { %v30_v43 = vld [vmem:[%s24_s23 + $0x28] sm:$0xff]  ;;  %v32_v62 = vld [vmem:[%s24_s23 + $0x38] sm:$0xff] }
  0x12   : > { %235 = vmatpush1.bf16.msra.mxu0 %v478_v13  ;;  %278 = vmatpush1.bf16.msra.mxu1 %v497_v20 }
  0x13   : > { %236 = vmatprep.subr.bf16.mxu0 %v480_v14  ;;  %279 = vmatprep.subr.bf16.mxu1 %v500_v21 }
  0x16   : > { %237 = vmatpush1.bf16.msra.mxu0 %v484_v18  ;;  %280 = vmatpush1.bf16.msra.mxu1 %v503_v24 }
  0x17   : > { %238 = vmatprep.subr.bf16.mxu0 %v486_v19  ;;  %281 = vmatprep.subr.bf16.mxu1 %v504_v25  ;;  %v361_v19 = vld [vmem:[#allocation3 + $0x8] sm:$0xff] }
  0x1a   : > { %239 = vmatpush1.bf16.msra.mxu0 %v490_v22  ;;  %282 = vmatpush1.bf16.msra.mxu1 %v506_v28 }
  0x1b   : > { %240 = vmatprep.subr.bf16.mxu0 %v492_v23  ;;  %283 = vmatprep.subr.bf16.mxu1 %v507_v29 }
  0x1e   : > { %241 = vmatpush1.bf16.msra.mxu0 %v496_v26  ;;  %284 = vmatpush1.bf16.msra.mxu1 %v509_v33 }
  0x1f   : > { %242 = vmatprep.subr.bf16.mxu0 %v498_v27  ;;  %285 = vmatprep.subr.bf16.mxu1 %v510_v34 }
  0x22   : > { %243 = vmatpush1.bf16.msra.mxu0 %v502_v30  ;;  %286 = vmatpush1.bf16.msra.mxu1 %v512_v36 }
  0x25   : > { %261 = vmatmul.mubr.bf16.vlgmr.msra.gmra.mrb[0].mxu0 %v35_v35  ;;  %304 = vmatmul.mubr.bf16.vlgmr.msra.gmra.mrb[0].mxu1 %v35_v35 }
  0xf8   : > { %v262_v39 = vpop.f32.mrb[0].mxu0  ;;  %v305_v53 = vpop.f32.mrb[0].mxu1 }
  0xf9   : > { %v314_v41 = vadd.f32 %v262_v39, %v25_v37  ;;  %v264_v42 = vpop.f32.mrb[1].mxu0  ;;  %v307_v55 = vpop.f32.mrb[1].mxu1  ;;  %v316_v57 = vadd.f32 %v305_v53, %v27_v51 }
  0xfa   : > { %v315_v44 = vadd.f32 %v264_v42, %v26_v38  ;;  %v266_v45 = vpop.f32.mrb[2].mxu0  ;;  %v309_v59 = vpop.f32.mrb[2].mxu1  ;;  %v317_v63 = vadd.f32 %v307_v55, %v28_v58 }
  0xfb   : > { %v436_v46 = vmul.f32 -1.442695, %v314_v41  ;;  %v318_v47 = vadd.f32 %v266_v45, %v29_v40  ;;  %v268_v48 = vpop.f32.mrb[3].mxu0  ;;  %v311_v60 = vpop.f32.mrb[3].mxu1  ;;  %v320_v61 = vadd.f32 %v309_v59, %v31_v56  ;;  %v438_v0 = vmul.f32 -1.442695, %v316_v57 }
  0xfc   : > { %v437_v49 = vmul.f32 -1.442695, %v315_v44  ;;  %v319_v50 = vadd.f32 %v268_v48, %v30_v43  ;;  %v321_v1 = vadd.f32 %v311_v60, %v32_v62 }
  0xfd   : > { %513 = vpow2.f32 %v436_v46  ;;  %v439_v52 = vmul.f32 -1.442695, %v318_v47  ;;  %v441_v2 = vmul.f32 -1.442695, %v320_v61 }
  0xfe   : > { %515 = vpow2.f32 %v437_v49  ;;  %v440_v54 = vmul.f32 -1.442695, %v319_v50 }
  0xff   : > { %517 = vpow2.f32 %v439_v52 }
 0x100   : > { %519 = vpow2.f32 %v440_v54 }
 0x101   : > { %521 = vtanh.f32 %v317_v63 }
 0x102   : > { %523 = vpow2.f32 %v438_v0 }
 0x103   : > { %525 = vtanh.f32 %v321_v1 }
 0x104   : > { %527 = vpow2.f32 %v441_v2 }
 0x107   : > { %v514_v3 = vpop.eup %513 }
 0x108   : > { %v516_v4 = vpop.eup %515  ;;  %v340_v5 = vadd.f32 1.0, %v514_v3 }
 0x109   : > { %v518_v6 = vpop.eup %517  ;;  %v341_v7 = vadd.f32 1.0, %v516_v4 }
 0x10a   : > { %v520_v8 = vpop.eup %519  ;;  %529 = vrcp.f32 %v340_v5  ;;  %v343_v9 = vadd.f32 1.0, %v518_v6 }
 0x10b   : > { %531 = vrcp.f32 %v341_v7  ;;  %v344_v10 = vadd.f32 1.0, %v520_v8  ;;  %v522_v11 = vpop.eup %521 }
 0x10c   : > { %533 = vrcp.f32 %v343_v9  ;;  %v524_v12 = vpop.eup %523 }
 0x10d   : > { %535 = vrcp.f32 %v344_v10  ;;  %v526_v13 = vpop.eup %525  ;;  %v342_v17 = vadd.f32 1.0, %v524_v12 }
 0x10e   : > { %v528_v14 = vpop.eup %527 }
 0x10f   : > { %v345_v24 = vadd.f32 1.0, %v528_v14  ;;  %537 = vrcp.f32 %v342_v17 }
 0x114   : > { %v530_v16 = vpop.eup %529 }
 0x115   : > { %v532_v18 = vpop.eup %531  ;;  %v364_v20 = vmul.f32 %v530_v16, %v522_v11 }
 0x116   : > { %v534_v21 = vpop.eup %533  ;;  %v362_v22 = vmul.f32 %v532_v18, %v360_v15 }
 0x117   : > { %v536_v23 = vpop.eup %535  ;;  %v365_v25 = vmul.f32 %v534_v21, %v526_v13 }
 0x118   : > { %v363_v26 = vmul.f32 %v536_v23, %v361_v19  ;;  %v366_v27 = vadd.f32 %v364_v20, %v362_v22 }
 0x119   : > { %v538_v29 = vpop.eup %537 }
 0x11a   : > { %539 = vtanh.f32 %v366_v27  ;;  %372 = vst [vmem:[#allocation3] sm:$0xff] %v366_v27  ;;  %v367_v28 = vadd.f32 %v365_v25, %v363_v26 }
 0x11b   : > { %541 = vrcp.f32 %v345_v24 }
 0x11c   : > { %543 = vtanh.f32 %v367_v28  ;;  %373 = vst [vmem:[#allocation3 + $0x8] sm:$0xff] %v367_v28 }
 0x124   : > { %v540_v30 = vpop.eup %539 }
 0x125   : > { %v542_v31 = vpop.eup %541  ;;  %v370_v32 = vmul.f32 %v540_v30, %v538_v29  ;;  %20 = sbr.rel (!%p18_p0) target bundleno = 3 (0x3), region = 37 }
 0x126   : > { %v544_v33 = vpop.eup %543 }
 0x127   : > { %374 = vst [vmem:[#allocation2] sm:$0xff] %v370_v32  ;;  %v371_v34 = vmul.f32 %v544_v33, %v542_v31 }
 0x129   : > { %375 = vst [vmem:[#allocation2 + $0x8] sm:$0xff] %v371_v34  ;;  %v453_v35 = vpack.c.bf16 %v371_v34, %v370_v32 }
 0x12b   : > { %454 = vst [vmem:[%s386_s27] sm:$0xff] %v453_v35  }

</bundles_post_ra>
